<compile_context>
chip_gen: v6e
topology: v6e:2x2x1
jax: 0.10.0
libtpu: 0.0.40
codegen_flags: <defaults>
</compile_context>

<pallas_src>
import functools

import jax
import jax.numpy as jnp
from jax.experimental import pallas as pl
from jax.experimental.pallas import tpu as pltpu

N_CLASS = 26
C_PAD = 128                       # lane-padded class dim used for the resident weight slab
PIPELINE_VMEM_BUDGET = 24 << 20   # bytes for the double-buffered x/out tiles (safe on v5e..v7x)
XLA_FALLBACK_MAX_ROWS = 2048      # below this, a fused XLA dot beats a standalone pallas_call


def _sublane_multiple(dtype) -> int:
    """Rows-per-sublane packing requirement for the block's 2nd-to-last dim."""
    return {4: 8, 2: 16, 1: 32}.get(jnp.dtype(dtype).itemsize, 8)


def prepare_textual_similarity_params(weight, bias, compute_dtype=None):
    """One-time (model-load) parameter prep.

    weight: [n_class, hidden] (PyTorch nn.Linear convention)
    bias:   [n_class]
    Returns (w_t, b2d):
      w_t: [hidden, 128] lane-dense, zero-padded, transposed weight (MXU RHS)
      b2d: [1, n_class] float32 bias (added to the f32 accumulator)
    """
    C, H = weight.shape
    assert C == N_CLASS
    if compute_dtype is None:
        compute_dtype = weight.dtype
    w_t = (
        jnp.zeros((H, C_PAD), dtype=compute_dtype)
        .at[:, :C]
        .set(weight.T.astype(compute_dtype))
    )
    b2d = bias.reshape(1, C).astype(jnp.float32)
    return w_t, b2d


def _linear_kernel(x_ref, w_ref, b_ref, o_ref):
    # x_ref: [TB, H] streamed tile, w_ref: [H, 128] resident, b_ref: [1, 26] resident,
    # o_ref: [TB, 26] streamed output tile.
    acc = jnp.dot(x_ref[...], w_ref[...], preferred_element_type=jnp.float32)  # [TB, 128]
    o_ref[...] = (acc[:, :N_CLASS] + b_ref[...]).astype(o_ref.dtype)


def _pick_tile_rows(batch, hidden, dtype) -> int:
    """Largest batch tile whose double-buffered x/out tiles fit the VMEM budget."""
    itemsize = jnp.dtype(dtype).itemsize
    sub = _sublane_multiple(dtype)
    # 2 buffers each for the x tile ([tb, H]) and the out tile (last dim pads to
    # 128 lanes in VMEM layout regardless of the 26-wide logical block).
    bytes_per_row = 2 * (hidden + C_PAD) * itemsize
    tb = PIPELINE_VMEM_BUDGET // max(bytes_per_row, 1)
    tb = max(sub, (tb // sub) * sub)
    # Never bigger than the sublane-rounded batch (tiny batches -> single tile).
    b_ceil = ((batch + sub - 1) // sub) * sub
    tb = min(tb, b_ceil)
    # Keep per-tile DMAs to a sane size even for very small hidden dims.
    tb = min(tb, 32768)
    return int(tb)


def _xla_forward(embeddings, w_t, b2d):
    return (embeddings @ w_t[:, :N_CLASS]).astype(embeddings.dtype) + b2d.astype(
        embeddings.dtype
    )


def textual_similarity_forward(embeddings, w_t, b2d, *, tb=None, use_pallas=None):
    """
    embeddings: [batch, hidden]   float32 / bfloat16
    w_t, b2d:   from prepare_textual_similarity_params()
    returns:    [batch, 26] logits
    """
    B, H = embeddings.shape
    assert w_t.shape == (H, C_PAD)

    if use_pallas is None:
        use_pallas = B >= XLA_FALLBACK_MAX_ROWS
    if not use_pallas:
        return _xla_forward(embeddings, w_t, b2d)

    sub = _sublane_multiple(embeddings.dtype)
    if tb is None:
        tb = _pick_tile_rows(B, H, embeddings.dtype)
    else:
        tb = max(sub, (int(tb) // sub) * sub)
    n_tiles = pl.cdiv(B, tb)

    # Explicit VMEM limit: actual usage * 2 headroom, clamped to [32, 48] MiB so it
    # raises v5e's 16 MiB default scoped limit but stays under v7x's 64 MiB physical.
    isz_x = jnp.dtype(embeddings.dtype).itemsize
    isz_w = jnp.dtype(w_t.dtype).itemsize
    needed = (
        2 * tb * H * isz_x          # double-buffered x tiles
        + 2 * tb * C_PAD * isz_x    # double-buffered out tiles (lane-padded in VMEM)
        + H * C_PAD * isz_w         # resident weight slab
        + C_PAD * 4                 # resident bias
    )
    vmem_limit = int(min(max(2 * needed, 32 << 20), 48 << 20))

    return pl.pallas_call(
        _linear_kernel,
        out_shape=jax.ShapeDtypeStruct((B, N_CLASS), embeddings.dtype),
        grid_spec=pltpu.PrefetchScalarGridSpec(
            num_scalar_prefetch=0,
            grid=(n_tiles,),
            in_specs=[
                # Streamed embeddings tiles (edge tile auto-clipped by the pipeline).
                pl.BlockSpec((tb, H), lambda i: (i, 0)),
                # VMEM-resident weight / bias: same block for every grid step.
                pl.BlockSpec((H, C_PAD), lambda i: (0, 0)),
                pl.BlockSpec((1, N_CLASS), lambda i: (0, 0)),
            ],
            # Last dim 26 == full array dim (legal); masked 26-lane stores are cheap
            # compared with writing a 128-wide padded output + a wrapper slice pass.
            out_specs=pl.BlockSpec((tb, N_CLASS), lambda i: (i, 0)),
        ),
        compiler_params=pltpu.CompilerParams(
            # TODO(synk): on v7x use pltpu.CORE_PARALLEL (or pl.core_map over a
            # tensorcore mesh) on the batch axis to actually engage both TCs;
            # "parallel" is kept here because it is a safe no-op on 1-TC chips.
            dimension_semantics=("parallel",),
            vmem_limit_bytes=vmem_limit,
        ),
        # TODO(synk): if a v7x trace still shows exposed DMA per step, add
        # pipeline_mode=pl.Buffered(3) on the embeddings BlockSpec (and shrink
        # the tile budget accordingly).
    )(embeddings, w_t, b2d)


if __name__ == "__main__":
    key = jax.random.PRNGKey(0)
    hidden = 32

    k_emb, k_w, k_b, k_emb2 = jax.random.split(key, 4)
    # Deterministic synthetic parameters matching nn.Linear(hidden, 26) shapes.
    weight = jax.random.normal(k_w, (N_CLASS, hidden), dtype=jnp.float32) * 0.02
    bias = jax.random.normal(k_b, (N_CLASS,), dtype=jnp.float32) * 0.01

    # One-time parameter prep (model-load time), hoisted out of the forward path.
    w_t, b2d = prepare_textual_similarity_params(weight, bias, jnp.float32)

    # Case 1: small batch, single tile (Pallas path forced so the kernel runs).
    batch = 8
    embeddings = jax.random.normal(k_emb, (batch, hidden), dtype=jnp.float32)
    logits = textual_similarity_forward(embeddings, w_t, b2d, use_pallas=True)
    jax.block_until_ready(logits)
    ref = embeddings @ weight.T + bias
    assert logits.shape == (batch, N_CLASS)
    assert jnp.allclose(logits, ref, atol=1e-5, rtol=1e-5)

    # Case 2: ragged batch (not a multiple of the tile) exercises the edge-tile
    # clipping path (no jnp.pad copy) and a multi-step grid.
    batch2 = 20
    embeddings2 = jax.random.normal(k_emb2, (batch2, hidden), dtype=jnp.float32)
    logits2 = textual_similarity_forward(embeddings2, w_t, b2d, tb=8, use_pallas=True)
    jax.block_until_ready(logits2)
    ref2 = embeddings2 @ weight.T + bias
    assert logits2.shape == (batch2, N_CLASS)
    assert jnp.allclose(logits2, ref2, atol=1e-5, rtol=1e-5)

    # Case 3: small-batch XLA fallback keeps identical semantics.
    logits3 = textual_similarity_forward(embeddings2, w_t, b2d)  # auto -> XLA dot
    jax.block_until_ready(logits3)
    assert jnp.allclose(logits3, ref2, atol=1e-5, rtol=1e-5)

    print("KERNEL_OK")
</pallas_src>

<mosaic_0001>
module attributes {stable_mosaic.version = 11 : i64} {
  func.func @_linear_kernel(%arg0: i32, %arg1: memref<8x32xf32, #tpu.memory_space<vmem>>, %arg2: memref<32x128xf32, #tpu.memory_space<vmem>>, %arg3: memref<1x26xf32, #tpu.memory_space<vmem>>, %arg4: memref<8x26xf32, #tpu.memory_space<vmem>>) attributes {dimension_semantics = [#tpu.dimension_semantics<parallel>], iteration_bounds = array<i64: 1>, scalar_prefetch = 0 : i64, scratch_operands = 0 : i64, tpu.core_type = #tpu.core_type<tc>, window_params = [{transform_indices = @transform_0, window_bounds = array<i64: 8, 32>}, {pipeline_mode = #tpu.pipeline_mode<synchronous>, transform_indices = @transform_1, window_bounds = array<i64: 32, 128>}, {pipeline_mode = #tpu.pipeline_mode<synchronous>, transform_indices = @transform_2, window_bounds = array<i64: 1, 26>}, {transform_indices = @transform_3, window_bounds = array<i64: 8, 26>}]} {
    %c0 = arith.constant 0 : index
    %c0_0 = arith.constant 0 : index
    %0 = vector.load %arg1[%c0, %c0_0] : memref<8x32xf32, #tpu.memory_space<vmem>>, vector<8x32xf32>
    %c0_1 = arith.constant 0 : index
    %c0_2 = arith.constant 0 : index
    %1 = vector.load %arg2[%c0_1, %c0_2] : memref<32x128xf32, #tpu.memory_space<vmem>>, vector<32x128xf32>
    %cst = arith.constant dense<0.000000e+00> : vector<8x128xf32>
    %2 = tpu.matmul %0, %1, %cst {dimension_numbers = #tpu.dot_dimension_numbers<[1], [0], [0], [1], [0, 0, 1, 1], [], []>} : vector<8x32xf32>, vector<32x128xf32>, vector<8x128xf32> -> vector<8x128xf32>
    %3 = vector.extract_strided_slice %2 {offsets = [0, 0], sizes = [8, 26], strides = [1, 1]} : vector<8x128xf32> to vector<8x26xf32>
    %c0_3 = arith.constant 0 : index
    %c0_4 = arith.constant 0 : index
    %4 = vector.load %arg3[%c0_3, %c0_4] : memref<1x26xf32, #tpu.memory_space<vmem>>, vector<1x26xf32>
    %5 = vector.broadcast %4 : vector<1x26xf32> to vector<8x26xf32>
    %6 = arith.addf %3, %5 : vector<8x26xf32>
    %c0_5 = arith.constant 0 : index
    %c0_6 = arith.constant 0 : index
    %7 = vector.load %arg4[%c0_5, %c0_6] : memref<8x26xf32, #tpu.memory_space<vmem>>, vector<8x26xf32>
    tpu.vector_store %arg4[%c0_5, %c0_6], %6 {strides = array<i32>} : memref<8x26xf32, #tpu.memory_space<vmem>>, vector<8x26xf32>,
    return
  }
  func.func @transform_0(%arg0: i32) -> (i32, i32) {
    %c0_i32 = arith.constant 0 : i32
    %c0_i32_0 = arith.constant 0 : i32
    return %arg0, %c0_i32 : i32, i32
  }
  func.func @transform_1(%arg0: i32) -> (i32, i32) {
    %c0_i32 = arith.constant 0 : i32
    %c0_i32_0 = arith.constant 0 : i32
    %c0_i32_1 = arith.constant 0 : i32
    return %c0_i32, %c0_i32_0 : i32, i32
  }
  func.func @transform_2(%arg0: i32) -> (i32, i32) {
    %c0_i32 = arith.constant 0 : i32
    %c0_i32_0 = arith.constant 0 : i32
    %c0_i32_1 = arith.constant 0 : i32
    return %c0_i32, %c0_i32_0 : i32, i32
  }
  func.func @transform_3(%arg0: i32) -> (i32, i32) {
    %c0_i32 = arith.constant 0 : i32
    %c0_i32_0 = arith.constant 0 : i32
    return %arg0, %c0_i32 : i32, i32
  }
}

</mosaic_0001>

<bundles_post_ra>
// kernel: tpu_custom_call.1
= control target key start
LH: loop header
LB: loop body
LE: loop exit
PB: predicated region body
PF: predicated region fallthrough
CT: control target
= control target key end

     0   :  { %8 = vsyncpa [#allocation3], 0  ;;  %s276_s0 = inlined_call_operand.hbm [shape: f32[8,32], index: 0, kind: input, shape index: {}]   ;;  %s277_s1 = inlined_call_operand.hbm [shape: f32[32,128], index: 1, kind: input, shape index: {}]   ;;  %s278_s2 = inlined_call_operand.vmem [shape: f32[1,26], index: 2, kind: input, shape index: {}]   ;;  %s279_s3 = inlined_call_operand.hbm [shape: f32[8,26], index: 3, kind: output, shape index: {}]  }
   0x1   :  { %9 = vsyncpa [#allocation6], 0 }
   0x2   :  { %10 = vsyncpa [#allocation4], 0  ;;  %s237_s12 = smov [#allocation2]   ;;  %s238_s14 = smov [#allocation5]  }
   0x3   :  { %s17_s13 = sshll.u32 %s237_s12, 4  ;;  %s26_s15 = sshll.u32 %s238_s14, 4  ;;  %s18_s13 = int_to_ptr.vmem [resolvable:$true] %s17_s13  ;;  %s27_s15 = int_to_ptr.vmem [resolvable:$true] %s26_s15 }
   0x4   :  { %s179_s16 = scalar_lea.vmem %s18_s13, 128  ;;  %p184_p1 = scmp.lt.s32.totalorder %s18_s13, %s18_s13 }
   0x5   :  { %p180_p0 = scmp.ne.s32.totalorder %s18_s13, %s179_s16  ;;  %p185_p2 = scmp.lt.s32.totalorder %s179_s16, %s179_s16 }
   0x7   :  { %p186_p3 = por %p185_p2, %p184_p1 }
   0x9   :  { %p187_p4 = pnand %p186_p3, %p180_p0 }
   0xb   :  { %190 = shalt.err (!%p187_p4)
}
   0xc   :  { %20 = dma.hbm_to_vmem [thread:$0]  %s276_s0, 128, %s18_s13, [#allocation3]  }
   0xd   :  { %s199_s19 = scalar_lea.vmem %s27_s15, 512  ;;  %p204_p6 = scmp.lt.s32.totalorder %s27_s15, %s27_s15 }
   0xe   :  { %p200_p5 = scmp.ne.s32.totalorder %s27_s15, %s199_s19  ;;  %p205_p7 = scmp.lt.s32.totalorder %s199_s19, %s199_s19 }
  0x10   :  { %p206_p8 = por %p205_p7, %p204_p6 }
  0x12   :  { %p207_p9 = pnand %p206_p8, %p200_p5 }
  0x14   :  { %210 = shalt.err (!%p207_p9)
}
  0x15   :  { %s239_s20 = smov 128   ;;  %s240_s21 = smov 8  }
  0x16   :  { %32 = dma.hbm_to_vmem [thread:$0]  %s277_s1, 512, %s27_s15, [#allocation6], %s239_s20, %s239_s20, %s240_s21  }
  0x17   :  { %231 = dma.done.wait [#allocation3], 128  }
  0x18   :  { %232 = vsyncadd [#allocation3], 4294967168 }
  0x19   :  { %233 = dma.done.wait [#allocation6], 512  }
  0x1a   :  { %234 = vsyncadd [#allocation6], 4294966784  ;;  %v241_v0 = vmov 0.0   ;;  %vm242_vm0 = vmmov 0   ;;  %v45_v1 = vld [vmem:[#allocation5 + $0x18] sm:$0xff]  ;;  %v44_v2 = vld [vmem:[#allocation5 + $0x10] sm:$0xff] }
  0x1b   :  { %153 = vmatprep.subr.mxu0 %v241_v0  ;;  %161 = vmatprep.mubr.msk.f32.mxu0 %vm242_vm0, %v241_v0  ;;  %v43_v3 = vld [vmem:[#allocation5 + $0x8] sm:$0xff]  ;;  %v42_v4 = vld [vmem:[#allocation5] sm:$0xff]  ;;  %v41_v5 = vld [vmem:[#allocation2] sm:$0xff]  ;;  %vm46_vm1 = vcmask 261120   ;;  %s243_s24 = smov [#allocation7]   ;;  %vm128_vm2 = vcmask 211968  }
  0x1c   :  { %154 = vmatpush3.msra.mxu0 %v45_v1  ;;  %v147_v6 = vld [vmem:[%s278_s2] ss:$0 sm:$0xff]  ;;  %s136_s25 = sshll.u32 %s243_s24, 4  ;;  %s137_s25 = int_to_ptr.vmem [resolvable:$true] %s136_s25 }
  0x1d   :  { %155 = vmatprep.subr.mxu0 %v241_v0  ;;  %s211_s26 = scalar_lea.vmem %s137_s25, 128  ;;  %p216_p11 = scmp.lt.s32.totalorder %s137_s25, %s137_s25 }
  0x1e   :  { %156 = vmatpush3.msra.mxu0 %v44_v2  ;;  %p212_p10 = scmp.ne.s32.totalorder %s137_s25, %s211_s26  ;;  %p217_p12 = scmp.lt.s32.totalorder %s211_s26, %s211_s26 }
  0x1f   :  { %157 = vmatprep.subr.mxu0 %v241_v0 }
  0x20   :  { %158 = vmatpush3.msra.mxu0 %v43_v3  ;;  %p218_p13 = por %p217_p12, %p216_p11 }
  0x21   :  { %159 = vmatprep.subr.mxu0 %v241_v0 }
  0x22   :  { %160 = vmatpush3.msra.mxu0 %v42_v4  ;;  %p219_p0 = pnand %p218_p13, %p212_p10 }
  0x23   :  { %162 = vmatmul.mubr.msk.f32.vlgmr.msra.gmra.mxu0 %vm46_vm1, %v41_v5 }
  0xe3   :  { %v116_v7 = vpop.f32.mrf.mxu0 }
  0xe4   :  { %v127_v8 = vadd.f32 %v147_v6, %v116_v7 }
  0xe5   :  { %v163_v9 = vpop.f32.mrf.mxu0 }
  0xe6   :  { %129 = vst.msk [vmem:[#allocation7] sm:$0xff] %vm128_vm2, %v127_v8 }
  0xe7   :  { %222 = shalt.err (!%p219_p0)
}
  0xe8   :  { %139 = dma.vmem_to_hbm [thread:$0]  %s137_s25, 128, %s279_s3, [#allocation4]  }
  0xe9   :  { %235 = dma.done.wait [#allocation4], 128  }
  0xea   :  { %236 = vsyncadd [#allocation4], 4294967168 }
  0xeb   :  { %143 = vsyncpa [#allocation3], 1 }
  0xec   :  { %144 = vsyncpa [#allocation6], 1 }
  0xed   :  { %145 = vsyncpa [#allocation4], 1 }

</bundles_post_ra>
